<compile_context>
chip_gen: v7x
topology: tpu7x:2x2x1
jax: 0.10.0
libtpu: 0.0.40
codegen_flags: <defaults>
</compile_context>

<pallas_src>
import functools

import jax
import jax.numpy as jnp
from jax import lax
from jax.experimental import pallas as pl
from jax.experimental.pallas import tpu as pltpu


def _detector_kernel(p_ref, whs_ref, io_ref, pperm_ref, *, na, C, ts, nx, stride):
    """Decode + layout-transpose one (batch, spatial-chunk) tile.

    p_ref    : (na, C, ts)  raw head outputs (channel on sublanes, spatial on lanes)
    whs_ref  : (na, C, 1)   per-row wh multiplier (= anchor_vec*stride on rows 2/3, 1 elsewhere)
    io_ref   : (na, ts, C)  decoded boxes/scores, already in (spatial, channel) order
    pperm_ref: (na, ts, C)  raw outputs, transposed (the PyTorch `p` return value)
    """
    si = pl.program_id(1)

    # Row (channel) index and global flattened-spatial index for this lane chunk.
    c_idx = lax.broadcasted_iota(jnp.int32, (C, ts), 0)
    s_idx = si * ts + lax.broadcasted_iota(jnp.int32, (C, ts), 1)
    s_f = s_idx.astype(jnp.float32)
    # gy = s // nx, gx = s % nx, computed in f32.  The +0.5 keeps floor() robust
    # to the multiply/divide rounding (margin 0.5/nx >> f32 error at these sizes).
    gy = jnp.floor((s_f + 0.5) * (1.0 / float(nx)))
    gx = s_f - gy * float(nx)
    g = jnp.where(c_idx == 0, gx, gy)          # only rows 0/1 actually use it

    is_xy = c_idx < 2
    is_wh = jnp.logical_and(c_idx >= 2, c_idx < 4)

    for a in range(na):                        # na is small & static -> unrolled
        x = p_ref[a]                           # (C, ts)
        sig = jax.nn.sigmoid(x)                # EUP, full tile
        e = jnp.exp(x)                         # EUP filler on non-wh rows (discarded by select)
        whs = whs_ref[a]                       # (C, 1), lane-broadcast
        io = jnp.where(is_xy, (sig + g) * stride,
                       jnp.where(is_wh, e * whs, sig))
        # Single full-tile stores, transposed to (spatial, channel) on the XLU.
        io_ref[a] = io.T
        pperm_ref[a] = x.T


def detector_forward(p, anchors, nc, img_size=416, training=False, s_block=2048):
    """JAX/Pallas equivalent of Detector.forward.

    p       : (bs, na*(nc+5), ny, nx) float32 (NCHW conv output)
    anchors : (na, 2) float32
    eval    : returns (io, p_perm) with io: (bs, na*ny*nx, nc+5),
              p_perm: (bs, na, ny, nx, nc+5)
    train   : returns p_perm only (pure layout change, no compute).
    """
    bs, ch, ny, nx = p.shape
    na = anchors.shape[0]
    C = nc + 5
    assert ch == na * C, f"channel mismatch: {ch} != {na}*{C}"
    S = ny * nx
    stride = float(img_size) / float(max(ny, nx))

    p_view = p.reshape(bs, na, C, ny, nx)                    # zero-copy
    if training:
        # Training branch is just the permute; no decode to fuse.
        return jnp.transpose(p_view, (0, 1, 3, 4, 2))

    p_flat = p_view.reshape(bs, na, C, S).astype(jnp.float32)  # zero-copy for f32 input

    # Per-(anchor, channel) multiplier so wh decode is exp(x) * anchor_vec * stride.
    anchor_vec = anchors.astype(jnp.float32) / stride          # matches PyTorch anchor_vec
    whs = jnp.ones((na, C), jnp.float32)
    whs = whs.at[:, 2].set(anchor_vec[:, 0] * stride)
    whs = whs.at[:, 3].set(anchor_vec[:, 1] * stride)
    whs = whs[:, :, None]                                      # (na, C, 1)

    # Lane (spatial) tiling: full S if small, otherwise 128-aligned chunks so the
    # pipeliner has several steps to overlap (last chunk may be partial -> masked).
    if S <= s_block:
        ts = S
    else:
        ts = max(128, (s_block // 128) * 128)
    n_s = pl.cdiv(S, ts)

    kernel = functools.partial(_detector_kernel, na=na, C=C, ts=ts, nx=nx,
                               stride=stride)

    io_t, p_perm_t = pl.pallas_call(
        kernel,
        out_shape=(
            jax.ShapeDtypeStruct((bs, na, S, C), jnp.float32),   # io
            jax.ShapeDtypeStruct((bs, na, S, C), jnp.float32),   # permuted p
        ),
        grid=(bs, n_s),
        in_specs=[
            pl.BlockSpec((None, na, C, ts), lambda b, si: (b, 0, 0, si)),
            pl.BlockSpec((na, C, 1), lambda b, si: (0, 0, 0)),
        ],
        out_specs=(
            pl.BlockSpec((None, na, ts, C), lambda b, si: (b, 0, si, 0)),
            pl.BlockSpec((None, na, ts, C), lambda b, si: (b, 0, si, 0)),
        ),
        compiler_params=pltpu.CompilerParams(
            dimension_semantics=("parallel", "parallel")),
    )(p_flat, whs)

    io = io_t.reshape(bs, na * S, C)                 # zero-copy
    p_perm = p_perm_t.reshape(bs, na, ny, nx, C)     # zero-copy
    return io, p_perm


def detector_reference(p, anchors, nc, img_size=416):
    """Pure-JAX reference mirroring the PyTorch eval-mode forward."""
    bs, ch, ny, nx = p.shape
    na = anchors.shape[0]
    C = nc + 5
    stride = float(img_size) / float(max(ny, nx))

    yv, xv = jnp.meshgrid(jnp.arange(ny), jnp.arange(nx), indexing="ij")
    grid_xy = jnp.stack([xv, yv], axis=2).astype(jnp.float32).reshape(1, 1, ny, nx, 2)
    anchor_wh = (anchors.astype(jnp.float32) / stride).reshape(1, na, 1, 1, 2)

    pp = jnp.transpose(p.reshape(bs, na, C, ny, nx), (0, 1, 3, 4, 2))
    xy = (jax.nn.sigmoid(pp[..., 0:2]) + grid_xy) * stride
    wh = (jnp.exp(pp[..., 2:4]) * anchor_wh) * stride
    rest = jax.nn.sigmoid(pp[..., 4:])
    io = jnp.concatenate([xy, wh, rest], axis=-1)
    return io.reshape(bs, -1, C), pp


if __name__ == "__main__":
    # Small deterministic example: bs=2, na=3 anchors, nc=3 classes, 16x16 grid.
    key = jax.random.PRNGKey(0)
    bs, ny, nx = 2, 16, 16
    nc = 3
    anchors = jnp.array([[10.0, 13.0], [16.0, 30.0], [33.0, 23.0]], dtype=jnp.float32)
    na = anchors.shape[0]
    C = nc + 5
    img_size = 416

    p = jax.random.normal(key, (bs, na * C, ny, nx), dtype=jnp.float32)

    fwd = jax.jit(functools.partial(detector_forward, nc=nc, img_size=img_size))
    io, p_perm = fwd(p, anchors)
    io = jax.block_until_ready(io)
    p_perm = jax.block_until_ready(p_perm)

    io_ref, p_ref = detector_reference(p, anchors, nc, img_size=img_size)

    assert io.shape == (bs, na * ny * nx, C), io.shape
    assert p_perm.shape == (bs, na, ny, nx, C), p_perm.shape
    assert jnp.allclose(io, io_ref, atol=1e-4, rtol=1e-5), "io mismatch vs reference"
    assert jnp.allclose(p_perm, p_ref, atol=1e-6, rtol=1e-6), "p mismatch vs reference"

    print("KERNEL_OK")
</pallas_src>

<mosaic_0001>
module attributes {stable_mosaic.version = 11 : i64} {
  func.func @_detector_kernel(%arg0: i32, %arg1: i32, %arg2: memref<1x3x8x256xf32, #tpu.memory_space<vmem>>, %arg3: memref<3x8x1xf32, #tpu.memory_space<vmem>>, %arg4: memref<1x3x256x8xf32, #tpu.memory_space<vmem>>, %arg5: memref<1x3x256x8xf32, #tpu.memory_space<vmem>>) attributes {dimension_semantics = [#tpu.dimension_semantics<parallel>, #tpu.dimension_semantics<parallel>], iteration_bounds = array<i64: 2, 1>, scalar_prefetch = 0 : i64, scratch_operands = 0 : i64, tpu.core_type = #tpu.core_type<tc>, window_params = [{transform_indices = @transform_0, window_bounds = array<i64: 1, 3, 8, 256>}, {pipeline_mode = #tpu.pipeline_mode<synchronous>, transform_indices = @transform_1, window_bounds = array<i64: 3, 8, 1>}, {transform_indices = @transform_2, window_bounds = array<i64: 1, 3, 256, 8>}, {transform_indices = @transform_3, window_bounds = array<i64: 1, 3, 256, 8>}]} {
    %0 = tpu.iota {dimensions = array<i32: 0>} : vector<8x256xi32>
    %c256_i32 = arith.constant 256 : i32
    %1 = arith.muli %arg1, %c256_i32 : i32
    %2 = tpu.iota {dimensions = array<i32: 1>} : vector<8x256xi32>
    %3 = vector.broadcast %1 : i32 to vector<8x256xi32>
    %4 = arith.addi %3, %2 : vector<8x256xi32>
    %5 = arith.sitofp %4 : vector<8x256xi32> to vector<8x256xf32>
    %cst = arith.constant 5.000000e-01 : f32
    %6 = vector.broadcast %cst : f32 to vector<8x256xf32>
    %7 = arith.addf %5, %6 : vector<8x256xf32>
    %cst_0 = arith.constant 6.250000e-02 : f32
    %8 = vector.broadcast %cst_0 : f32 to vector<8x256xf32>
    %9 = arith.mulf %7, %8 : vector<8x256xf32>
    %10 = math.floor %9 : vector<8x256xf32>
    %cst_1 = arith.constant 1.600000e+01 : f32
    %11 = vector.broadcast %cst_1 : f32 to vector<8x256xf32>
    %12 = arith.mulf %10, %11 : vector<8x256xf32>
    %13 = arith.subf %5, %12 : vector<8x256xf32>
    %c0_i32 = arith.constant 0 : i32
    %14 = vector.broadcast %c0_i32 : i32 to vector<8x256xi32>
    %15 = arith.cmpi eq, %0, %14 : vector<8x256xi32>
    %16 = arith.select %15, %13, %10 : vector<8x256xi1>, vector<8x256xf32>
    %c2_i32 = arith.constant 2 : i32
    %17 = vector.broadcast %c2_i32 : i32 to vector<8x256xi32>
    %18 = arith.cmpi slt, %0, %17 : vector<8x256xi32>
    %c2_i32_2 = arith.constant 2 : i32
    %19 = vector.broadcast %c2_i32_2 : i32 to vector<8x256xi32>
    %20 = arith.cmpi sge, %0, %19 : vector<8x256xi32>
    %c4_i32 = arith.constant 4 : i32
    %21 = vector.broadcast %c4_i32 : i32 to vector<8x256xi32>
    %22 = arith.cmpi slt, %0, %21 : vector<8x256xi32>
    %23 = arith.andi %20, %22 : vector<8x256xi1>
    %c0 = arith.constant 0 : index
    %c0_3 = arith.constant 0 : index
    %c0_4 = arith.constant 0 : index
    %c0_5 = arith.constant 0 : index
    %24 = vector.load %arg2[%c0, %c0_3, %c0_4, %c0_5] : memref<1x3x8x256xf32, #tpu.memory_space<vmem>>, vector<1x1x8x256xf32>
    %25 = vector.shape_cast %24 : vector<1x1x8x256xf32> to vector<8x256xf32>
    %26 = arith.negf %25 : vector<8x256xf32>
    %27 = math.exp %26 : vector<8x256xf32>
    %cst_6 = arith.constant 1.000000e+00 : f32
    %28 = vector.broadcast %cst_6 : f32 to vector<8x256xf32>
    %29 = arith.addf %28, %27 : vector<8x256xf32>
    %30 = arith.divf %28, %29 : vector<8x256xf32>
    %31 = math.exp %25 : vector<8x256xf32>
    %c0_7 = arith.constant 0 : index
    %c0_8 = arith.constant 0 : index
    %c0_9 = arith.constant 0 : index
    %32 = vector.load %arg3[%c0_7, %c0_8, %c0_9] : memref<3x8x1xf32, #tpu.memory_space<vmem>>, vector<1x8x1xf32>
    %33 = vector.shape_cast %32 : vector<1x8x1xf32> to vector<8x1xf32>
    %34 = arith.addf %30, %16 : vector<8x256xf32>
    %cst_10 = arith.constant 2.600000e+01 : f32
    %35 = vector.broadcast %cst_10 : f32 to vector<8x256xf32>
    %36 = arith.mulf %34, %35 : vector<8x256xf32>
    %37 = vector.broadcast %33 : vector<8x1xf32> to vector<8x256xf32>
    %38 = arith.mulf %31, %37 : vector<8x256xf32>
    %39 = arith.select %23, %38, %30 : vector<8x256xi1>, vector<8x256xf32>
    %40 = arith.select %18, %36, %39 : vector<8x256xi1>, vector<8x256xf32>
    %41 = tpu.transpose %40, [1, 0] : vector<8x256xf32> -> vector<256x8xf32>
    %c0_11 = arith.constant 0 : index
    %c0_12 = arith.constant 0 : index
    %c0_13 = arith.constant 0 : index
    %c0_14 = arith.constant 0 : index
    %42 = vector.load %arg4[%c0_11, %c0_12, %c0_13, %c0_14] : memref<1x3x256x8xf32, #tpu.memory_space<vmem>>, vector<1x1x256x8xf32>
    %43 = vector.shape_cast %42 : vector<1x1x256x8xf32> to vector<256x8xf32>
    %44 = vector.shape_cast %41 : vector<256x8xf32> to vector<1x1x256x8xf32>
    tpu.vector_store %arg4[%c0_11, %c0_12, %c0_13, %c0_14], %44 {strides = array<i32>} : memref<1x3x256x8xf32, #tpu.memory_space<vmem>>, vector<1x1x256x8xf32>,
    %45 = tpu.transpose %25, [1, 0] : vector<8x256xf32> -> vector<256x8xf32>
    %c0_15 = arith.constant 0 : index
    %c0_16 = arith.constant 0 : index
    %c0_17 = arith.constant 0 : index
    %c0_18 = arith.constant 0 : index
    %46 = vector.load %arg5[%c0_15, %c0_16, %c0_17, %c0_18] : memref<1x3x256x8xf32, #tpu.memory_space<vmem>>, vector<1x1x256x8xf32>
    %47 = vector.shape_cast %46 : vector<1x1x256x8xf32> to vector<256x8xf32>
    %48 = vector.shape_cast %45 : vector<256x8xf32> to vector<1x1x256x8xf32>
    tpu.vector_store %arg5[%c0_15, %c0_16, %c0_17, %c0_18], %48 {strides = array<i32>} : memref<1x3x256x8xf32, #tpu.memory_space<vmem>>, vector<1x1x256x8xf32>,
    %c0_19 = arith.constant 0 : index
    %c1 = arith.constant 1 : index
    %c0_20 = arith.constant 0 : index
    %c0_21 = arith.constant 0 : index
    %49 = vector.load %arg2[%c0_19, %c1, %c0_20, %c0_21] : memref<1x3x8x256xf32, #tpu.memory_space<vmem>>, vector<1x1x8x256xf32>
    %50 = vector.shape_cast %49 : vector<1x1x8x256xf32> to vector<8x256xf32>
    %51 = arith.negf %50 : vector<8x256xf32>
    %52 = math.exp %51 : vector<8x256xf32>
    %cst_22 = arith.constant 1.000000e+00 : f32
    %53 = vector.broadcast %cst_22 : f32 to vector<8x256xf32>
    %54 = arith.addf %53, %52 : vector<8x256xf32>
    %55 = arith.divf %53, %54 : vector<8x256xf32>
    %56 = math.exp %50 : vector<8x256xf32>
    %c1_23 = arith.constant 1 : index
    %c0_24 = arith.constant 0 : index
    %c0_25 = arith.constant 0 : index
    %57 = vector.load %arg3[%c1_23, %c0_24, %c0_25] : memref<3x8x1xf32, #tpu.memory_space<vmem>>, vector<1x8x1xf32>
    %58 = vector.shape_cast %57 : vector<1x8x1xf32> to vector<8x1xf32>
    %59 = arith.addf %55, %16 : vector<8x256xf32>
    %cst_26 = arith.constant 2.600000e+01 : f32
    %60 = vector.broadcast %cst_26 : f32 to vector<8x256xf32>
    %61 = arith.mulf %59, %60 : vector<8x256xf32>
    %62 = vector.broadcast %58 : vector<8x1xf32> to vector<8x256xf32>
    %63 = arith.mulf %56, %62 : vector<8x256xf32>
    %64 = arith.select %23, %63, %55 : vector<8x256xi1>, vector<8x256xf32>
    %65 = arith.select %18, %61, %64 : vector<8x256xi1>, vector<8x256xf32>
    %66 = tpu.transpose %65, [1, 0] : vector<8x256xf32> -> vector<256x8xf32>
    %c0_27 = arith.constant 0 : index
    %c1_28 = arith.constant 1 : index
    %c0_29 = arith.constant 0 : index
    %c0_30 = arith.constant 0 : index
    %67 = vector.load %arg4[%c0_27, %c1_28, %c0_29, %c0_30] : memref<1x3x256x8xf32, #tpu.memory_space<vmem>>, vector<1x1x256x8xf32>
    %68 = vector.shape_cast %67 : vector<1x1x256x8xf32> to vector<256x8xf32>
    %69 = vector.shape_cast %66 : vector<256x8xf32> to vector<1x1x256x8xf32>
    tpu.vector_store %arg4[%c0_27, %c1_28, %c0_29, %c0_30], %69 {strides = array<i32>} : memref<1x3x256x8xf32, #tpu.memory_space<vmem>>, vector<1x1x256x8xf32>,
    %70 = tpu.transpose %50, [1, 0] : vector<8x256xf32> -> vector<256x8xf32>
    %c0_31 = arith.constant 0 : index
    %c1_32 = arith.constant 1 : index
    %c0_33 = arith.constant 0 : index
    %c0_34 = arith.constant 0 : index
    %71 = vector.load %arg5[%c0_31, %c1_32, %c0_33, %c0_34] : memref<1x3x256x8xf32, #tpu.memory_space<vmem>>, vector<1x1x256x8xf32>
    %72 = vector.shape_cast %71 : vector<1x1x256x8xf32> to vector<256x8xf32>
    %73 = vector.shape_cast %70 : vector<256x8xf32> to vector<1x1x256x8xf32>
    tpu.vector_store %arg5[%c0_31, %c1_32, %c0_33, %c0_34], %73 {strides = array<i32>} : memref<1x3x256x8xf32, #tpu.memory_space<vmem>>, vector<1x1x256x8xf32>,
    %c0_35 = arith.constant 0 : index
    %c2 = arith.constant 2 : index
    %c0_36 = arith.constant 0 : index
    %c0_37 = arith.constant 0 : index
    %74 = vector.load %arg2[%c0_35, %c2, %c0_36, %c0_37] : memref<1x3x8x256xf32, #tpu.memory_space<vmem>>, vector<1x1x8x256xf32>
    %75 = vector.shape_cast %74 : vector<1x1x8x256xf32> to vector<8x256xf32>
    %76 = arith.negf %75 : vector<8x256xf32>
    %77 = math.exp %76 : vector<8x256xf32>
    %cst_38 = arith.constant 1.000000e+00 : f32
    %78 = vector.broadcast %cst_38 : f32 to vector<8x256xf32>
    %79 = arith.addf %78, %77 : vector<8x256xf32>
    %80 = arith.divf %78, %79 : vector<8x256xf32>
    %81 = math.exp %75 : vector<8x256xf32>
    %c2_39 = arith.constant 2 : index
    %c0_40 = arith.constant 0 : index
    %c0_41 = arith.constant 0 : index
    %82 = vector.load %arg3[%c2_39, %c0_40, %c0_41] : memref<3x8x1xf32, #tpu.memory_space<vmem>>, vector<1x8x1xf32>
    %83 = vector.shape_cast %82 : vector<1x8x1xf32> to vector<8x1xf32>
    %84 = arith.addf %80, %16 : vector<8x256xf32>
    %cst_42 = arith.constant 2.600000e+01 : f32
    %85 = vector.broadcast %cst_42 : f32 to vector<8x256xf32>
    %86 = arith.mulf %84, %85 : vector<8x256xf32>
    %87 = vector.broadcast %83 : vector<8x1xf32> to vector<8x256xf32>
    %88 = arith.mulf %81, %87 : vector<8x256xf32>
    %89 = arith.select %23, %88, %80 : vector<8x256xi1>, vector<8x256xf32>
    %90 = arith.select %18, %86, %89 : vector<8x256xi1>, vector<8x256xf32>
    %91 = tpu.transpose %90, [1, 0] : vector<8x256xf32> -> vector<256x8xf32>
    %c0_43 = arith.constant 0 : index
    %c2_44 = arith.constant 2 : index
    %c0_45 = arith.constant 0 : index
    %c0_46 = arith.constant 0 : index
    %92 = vector.load %arg4[%c0_43, %c2_44, %c0_45, %c0_46] : memref<1x3x256x8xf32, #tpu.memory_space<vmem>>, vector<1x1x256x8xf32>
    %93 = vector.shape_cast %92 : vector<1x1x256x8xf32> to vector<256x8xf32>
    %94 = vector.shape_cast %91 : vector<256x8xf32> to vector<1x1x256x8xf32>
    tpu.vector_store %arg4[%c0_43, %c2_44, %c0_45, %c0_46], %94 {strides = array<i32>} : memref<1x3x256x8xf32, #tpu.memory_space<vmem>>, vector<1x1x256x8xf32>,
    %95 = tpu.transpose %75, [1, 0] : vector<8x256xf32> -> vector<256x8xf32>
    %c0_47 = arith.constant 0 : index
    %c2_48 = arith.constant 2 : index
    %c0_49 = arith.constant 0 : index
    %c0_50 = arith.constant 0 : index
    %96 = vector.load %arg5[%c0_47, %c2_48, %c0_49, %c0_50] : memref<1x3x256x8xf32, #tpu.memory_space<vmem>>, vector<1x1x256x8xf32>
    %97 = vector.shape_cast %96 : vector<1x1x256x8xf32> to vector<256x8xf32>
    %98 = vector.shape_cast %95 : vector<256x8xf32> to vector<1x1x256x8xf32>
    tpu.vector_store %arg5[%c0_47, %c2_48, %c0_49, %c0_50], %98 {strides = array<i32>} : memref<1x3x256x8xf32, #tpu.memory_space<vmem>>, vector<1x1x256x8xf32>,
    return
  }
  func.func @transform_0(%arg0: i32, %arg1: i32) -> (i32, i32, i32, i32) {
    %c0_i32 = arith.constant 0 : i32
    %c0_i32_0 = arith.constant 0 : i32
    %c0_i32_1 = arith.constant 0 : i32
    return %arg0, %c0_i32, %c0_i32_0, %arg1 : i32, i32, i32, i32
  }
  func.func @transform_1(%arg0: i32, %arg1: i32) -> (i32, i32, i32) {
    %c0_i32 = arith.constant 0 : i32
    %c0_i32_0 = arith.constant 0 : i32
    %c0_i32_1 = arith.constant 0 : i32
    %c0_i32_2 = arith.constant 0 : i32
    return %c0_i32, %c0_i32_0, %c0_i32_1 : i32, i32, i32
  }
  func.func @transform_2(%arg0: i32, %arg1: i32) -> (i32, i32, i32, i32) {
    %c0_i32 = arith.constant 0 : i32
    %c0_i32_0 = arith.constant 0 : i32
    %c0_i32_1 = arith.constant 0 : i32
    return %arg0, %c0_i32, %arg1, %c0_i32_0 : i32, i32, i32, i32
  }
  func.func @transform_3(%arg0: i32, %arg1: i32) -> (i32, i32, i32, i32) {
    %c0_i32 = arith.constant 0 : i32
    %c0_i32_0 = arith.constant 0 : i32
    %c0_i32_1 = arith.constant 0 : i32
    return %arg0, %c0_i32, %arg1, %c0_i32_0 : i32, i32, i32, i32
  }
}

</mosaic_0001>

<bundles_post_ra>
// kernel: detector_forward.1
= control target key start
LH: loop header
LB: loop body
LE: loop exit
PB: predicated region body
PF: predicated region fallthrough
CT: control target
= control target key end

     0   :  { %s1347_s12 = smov 0   ;;  %s1349_s13 = smov 0   ;;  %s1858_s0 = inlined_call_operand.vmem [shape: f32[2,3,8,256], index: 0, kind: input, shape index: {}]   ;;  %s1859_s1 = inlined_call_operand.vmem [shape: f32[3,8,1], index: 1, kind: input, shape index: {}]   ;;  %s1860_s2 = inlined_call_operand.vmem [shape: f32[2,3,256,8], index: 2, kind: output, shape index: {0}]   ;;  %s1861_s3 = inlined_call_operand.vmem [shape: f32[2,3,256,8], index: 3, kind: output, shape index: {1}]  }
   0x1   :  { %s1351_s14 = smov 0  }
   0x2 LB: > { %s26_s15 = sadd.s32 1, %s1320_s13  ;;  %p1090_p0 = scmp.ge.s32.totalorder %s1324_s14, 1  ;;  %s1324_s14 = sphi %s1351_s14, %s14_s14   ;;  %s1320_s13 = sphi %s1349_s13, %s1865_s13   ;;  %s1316_s12 = sphi %s1347_s12, %s1864_s12  }
   0x3   : > { %p28_p1 = scmp.ge.s32.totalorder %s26_s15, 2  ;;  %p163_p2 = scmp.lt.s32.totalorder %s1324_s14, 3 }
   0x5   : > { %s1867_s15 = smov (%p28_p1, %s26_s15), 0  ;;  %p164_p3 = pnand %p1090_p0, %p163_p2 }
   0x6   : > { %v280_v0 = vld [vmem:[%s1859_s1] sm:$0xff] (!%p164_p3)  ;;  %v1100_v1 = vld [vmem:[%s1859_s1 + $0x8] sm:$0xff] (!%p164_p3)  ;;  %v1326_v2 = vmov (!%p164_p3), 0   ;;  %v1169_v3 = vld [vmem:[%s1859_s1 + $0x10] sm:$0xff] (!%p164_p3)  ;;  %p205_p4 = scmp.lt.s32.totalorder (!%p164_p3), %s1316_s12, 1  ;;  %v234_v6 = vlaneseq (!%p164_p3)  ;;  %vm360_vm5 = vcmask (!%p164_p3), 64512  }
   0x7   : > { %167 = sbr.rel (%p164_p3) target bundleno = 650 (0x28a), region = 28  ;;  %1264 = vset.pattern.permute.xlu0 (!%p164_p3), %v1326_v2  ;;  %1265 = vset.pattern.permute.xlu1 (!%p164_p3), %v1326_v2 }
   0x8   : > { %287 = vperm.xlu0 (!%p164_p3), %1264, %v280_v0   ;;  %516 = vperm.xlu1 (!%p164_p3), %1265, %v1100_v1   ;;  %v238_v13 = vand.u32 (!%p164_p3), 127, %v234_v6  ;;  %v1402_v45 = vshrl.u32 (!%p164_p3), %v234_v6, 7 }
   0xa   : > { %v239_v18 = vadd.s32 (!%p164_p3), 128, %v238_v13  ;;  %v243_v20 = vcvt.s32.f32 (!%p164_p3), %v238_v13  ;;  %vm255_vm0 = vcmp.eq.s32.totalorder (!%p164_p3), %v1402_v45, 0  ;;  %vm259_vm1 = vcmp.ge.s32.totalorder (!%p164_p3), %v1402_v45, 2 }
   0xb   : > { %vm260_vm2 = vcmp.lt.s32.totalorder (!%p164_p3), %v1402_v45, 4  ;;  %vm258_vm3 = vcmp.lt.s32.totalorder (!%p164_p3), %v1402_v45, 2 }
   0xc   : > { %746 = vperm.xlu0 (!%p164_p3), %1264, %v1169_v3   ;;  %v244_v19 = vcvt.s32.f32 (!%p164_p3), %v239_v18  ;;  %v245_v23 = vadd.f32 (!%p164_p3), 0.5, %v243_v20  ;;  %vm1410_vm4 = vmand (!%p164_p3), %vm259_vm1, %vm260_vm2 }
   0xe   : > { %s1869_s12 = smov (!%p205_p4, %s1316_s12), 1  ;;  %v246_v22 = vadd.f32 0.5, %v244_v19  ;;  %v247_v32 = vmul.f32 0.0625, %v245_v23 }
   0xf   : > { %s1236_s22 = smul.u32 48, %s1869_s12 }
  0x10   : > { %v248_v30 = vmul.f32 0.0625, %v246_v22  ;;  %v249_v38 = vfloor.f32 %v247_v32  ;;  %s1237_s26 = smul.u32 768, %s1869_s12 }
  0x11   : > { %s212_s25 = scalar_lea.vmem %s1858_s0, %s1236_s22 }
  0x12   : > { %v1380_v4 = vld [vmem:[%s212_s25] sm:$0xff]  ;;  %v1382_v5 = vld [vmem:[%s212_s25 + $0x8] sm:$0xff]  ;;  %v1384_v7 = vld [vmem:[%s212_s25 + $0x10] sm:$0xff]  ;;  %v250_v37 = vfloor.f32 %v248_v30  ;;  %v251_v44 = vmul.f32 16.0, %v249_v38  ;;  %s1450_s29 = scalar_lea.vmem %s1860_s2, %s1237_s26  ;;  %s1523_s5 = scalar_lea.vmem %s1861_s3, %s1237_s26 }
  0x13   : > { %v1094_v8 = vmul.f32 -1.442695, %v1380_v4  ;;  %v1387_v9 = vld [vmem:[%s212_s25 + $0x18] sm:$0xff]  ;;  %v1095_v10 = vmul.f32 -1.442695, %v1382_v5  ;;  %v1390_v11 = vld [vmem:[%s212_s25 + $0x20] sm:$0xff] }
  0x14   : > { %v1392_v12 = vld [vmem:[%s212_s25 + $0x28] sm:$0xff]  ;;  %v1098_v14 = vmul.f32 -1.442695, %v1384_v7  ;;  %v1099_v15 = vmul.f32 -1.442695, %v1387_v9  ;;  %v252_v43 = vmul.f32 16.0, %v250_v37  ;;  %v253_v50 = vsub.f32 %v243_v20, %v251_v44 }
  0x15   : > { %1266 = vpow2.f32 %v1094_v8  ;;  %v1167_v16 = vmul.f32 -1.442695, %v1390_v11  ;;  %v1168_v17 = vmul.f32 -1.442695, %v1392_v12  ;;  %v276_v26 = vmul.f32 1.442695, %v1380_v4 }
  0x16   : > { %1268 = vpow2.f32 %v1095_v10  ;;  %v278_v40 = vmul.f32 1.442695, %v1382_v5  ;;  %v504_v41 = vmul.f32 1.442695, %v1384_v7  ;;  %v506_v42 = vmul.f32 1.442695, %v1387_v9 }
  0x17   : > { %1270 = vpow2.f32 %v1098_v14  ;;  %v734_v46 = vmul.f32 1.442695, %v1390_v11  ;;  %v736_v47 = vmul.f32 1.442695, %v1392_v12  ;;  %v254_v49 = vsub.f32 %v244_v19, %v252_v43 }
  0x18   : > { %1272 = vpow2.f32 %v1099_v15  ;;  %v256_v56 = vsel %vm255_vm0, %v253_v50, %v249_v38 }
  0x19   : > { %1274 = vpow2.f32 %v1167_v16  ;;  %v257_v55 = vsel %vm255_vm0, %v254_v49, %v250_v37 }
  0x1a   : > { %1276 = vpow2.f32 %v1168_v17 }
  0x1b   : > { %1278 = vpow2.f32 %v276_v26 }
  0x1f   : > { %v1267_v21 = vpop.eup %1266 }
  0x20   : > { %v1269_v24 = vpop.eup %1268  ;;  %v270_v28 = vadd.f32 1.0, %v1267_v21 }
  0x21   : > { %v1271_v25 = vpop.eup %1270  ;;  %v271_v31 = vadd.f32 1.0, %v1269_v24 }
  0x22   : > { %v1273_v27 = vpop.eup %1272  ;;  %v498_v34 = vadd.f32 1.0, %v1271_v25  ;;  %1280 = vrcp.f32 %v270_v28 }
  0x23   : > { %v1275_v29 = vpop.eup %1274  ;;  %v499_v35 = vadd.f32 1.0, %v1273_v27  ;;  %1282 = vrcp.f32 %v271_v31 }
  0x24   : > { %v1277_v33 = vpop.eup %1276  ;;  %v728_v36 = vadd.f32 1.0, %v1275_v29  ;;  %1284 = vrcp.f32 %v498_v34 }
  0x25   : > { %v729_v39 = vadd.f32 1.0, %v1277_v33  ;;  %1286 = vrcp.f32 %v499_v35  ;;  %v1279_v48 = vpop.eup %1278 }
  0x26   : > { %1288 = vrcp.f32 %v728_v36 }
  0x27   : > { %1290 = vrcp.f32 %v729_v39 }
  0x28   : > { %1292 = vpow2.f32 %v278_v40 }
  0x29   : > { %1294 = vpow2.f32 %v504_v41 }
  0x2a   : > { %1296 = vpow2.f32 %v506_v42 }
  0x2b   : > { %1298 = vpow2.f32 %v734_v46 }
  0x2c   : > { %v1281_v51 = vpop.eup %1280  ;;  %1300 = vpow2.f32 %v736_v47 }
  0x2d   : > { %v1283_v52 = vpop.eup %1282  ;;  %v281_v61 = vadd.f32 %v1281_v51, %v256_v56 }
  0x2e   : > { %v1285_v53 = vpop.eup %1284  ;;  %v282_v60 = vadd.f32 %v1283_v52, %v257_v55 }
  0x2f   : > { %v1287_v54 = vpop.eup %1286  ;;  %v510_v63 = vadd.f32 %v1285_v53, %v256_v56  ;;  %v283_v13 = vmul.f32 26.0, %v281_v61 }
  0x30   : > { %v1289_v57 = vpop.eup %1288  ;;  %v511_v62 = vadd.f32 %v1287_v54, %v257_v55  ;;  %v284_v10 = vmul.f32 26.0, %v282_v60 }
  0x31   : > { %v1291_v58 = vpop.eup %1290  ;;  %v740_v2 = vadd.f32 %v1289_v57, %v256_v56  ;;  %v512_v16 = vmul.f32 26.0, %v510_v63 }
  0x32   : > { %v1293_v59 = vpop.eup %1292  ;;  %v741_v3 = vadd.f32 %v1291_v58, %v257_v55  ;;  %v513_v15 = vmul.f32 26.0, %v511_v62 }
  0x33   : > { %v1295_v0 = vpop.eup %1294  ;;  %v742_v23 = vmul.f32 26.0, %v740_v2 }
  0x34   : > { %v1297_v1 = vpop.eup %1296  ;;  %v743_v24 = vmul.f32 26.0, %v741_v3 }
  0x35   : > { %v1299_v17 = vpop.eup %1298 }
  0x36   : > { %v1301_v22 = vpop.eup %1300 }
  0x87   : > { %v288_v6 = vpop.permute.xlu0 %287  ;;  %v517_v14 = vpop.permute.xlu1 %516 }
  0x88   : > { %v290_v18 = vmul.f32 %v1279_v48, %v288_v6  ;;  %v291_v19 = vmul.f32 %v1293_v59, %v288_v6  ;;  %v519_v20 = vmul.f32 %v1295_v0, %v517_v14  ;;  %v520_v21 = vmul.f32 %v1297_v1, %v517_v14 }
  0x8a   : > { %v293_v25 = vsel %vm1410_vm4, %v291_v19, %v1283_v52  ;;  %v292_v26 = vsel %vm1410_vm4, %v290_v18, %v1281_v51  ;;  %v522_v27 = vsel %vm1410_vm4, %v520_v21, %v1287_v54  ;;  %v521_v28 = vsel %vm1410_vm4, %v519_v20, %v1285_v53 }
  0x8b   : > { %v747_v29 = vpop.permute.xlu0 %746  ;;  %v295_v30 = vsel %vm258_vm3, %v284_v10, %v293_v25  ;;  %v294_v31 = vsel %vm258_vm3, %v283_v13, %v292_v26  ;;  %v524_v32 = vsel %vm258_vm3, %v513_v15, %v522_v27  ;;  %v523_v33 = vsel %vm258_vm3, %v512_v16, %v521_v28 }
  0x8c   : > { %v749_v34 = vmul.f32 %v1299_v17, %v747_v29  ;;  %v750_v35 = vmul.f32 %v1301_v22, %v747_v29  ;;  %328 = vxpose.xlu1.b32.start.end [1/1] (short) %v295_v30, 128  ;;  %296 = vxpose.xlu0.b32.start.end [1/1] (short) %v294_v31, 128 }
  0x8e   : > { %v751_v36 = vsel %vm1410_vm4, %v749_v34, %v1289_v57  ;;  %v752_v37 = vsel %vm1410_vm4, %v750_v35, %v1291_v58 }
  0x8f   : > { %v1436_v38 = vsel %vm258_vm3, %v742_v23, %v751_v36  ;;  %v1440_v39 = vsel %vm258_vm3, %v743_v24, %v752_v37 }
  0xc9   : > { %393 = vxpose.xlu1.b32.start.end [1/1] (short) %v1380_v4, 128  ;;  %425 = vxpose.xlu0.b32.start.end [1/1] (short) %v1382_v5, 128 }
 0x106   : > { %557 = vxpose.xlu1.b32.start.end [1/1] (short) %v524_v32, 128  ;;  %525 = vxpose.xlu0.b32.start.end [1/1] (short) %v523_v33, 128 }
 0x10c   : > { %v344_v4 = vpop.trf.xlu1  ;;  %v312_v5 = vpop.trf.xlu0 }
 0x10d   : > { %377 = vst.msk [vmem:[%s1450_s29 + $0x80] sm:$0xff] %vm360_vm5, %v344_v4  ;;  %361 = vst.msk [vmem:[%s1450_s29] sm:$0xff] %vm360_vm5, %v312_v5 }
 0x110   : > { %v345_v40 = vpop.trf.xlu1  ;;  %v313_v41 = vpop.trf.xlu0 }
 0x111   : > { %378 = vst.msk [vmem:[%s1450_s29 + $0x88] sm:$0xff] %vm360_vm5, %v345_v40  ;;  %362 = vst.msk [vmem:[%s1450_s29 + $0x8] sm:$0xff] %vm360_vm5, %v313_v41 }
 0x114   : > { %v346_v42 = vpop.trf.xlu1  ;;  %v314_v43 = vpop.trf.xlu0 }
 0x115   : > { %379 = vst.msk [vmem:[%s1450_s29 + $0x90] sm:$0xff] %vm360_vm5, %v346_v42  ;;  %363 = vst.msk [vmem:[%s1450_s29 + $0x10] sm:$0xff] %vm360_vm5, %v314_v43 }
 0x118   : > { %v347_v44 = vpop.trf.xlu1  ;;  %v315_v45 = vpop.trf.xlu0 }
 0x119   : > { %380 = vst.msk [vmem:[%s1450_s29 + $0x98] sm:$0xff] %vm360_vm5, %v347_v44  ;;  %364 = vst.msk [vmem:[%s1450_s29 + $0x18] sm:$0xff] %vm360_vm5, %v315_v45 }
 0x11c   : > { %v348_v46 = vpop.trf.xlu1  ;;  %v316_v47 = vpop.trf.xlu0 }
 0x11d   : > { %381 = vst.msk [vmem:[%s1450_s29 + $0xa0] sm:$0xff] %vm360_vm5, %v348_v46  ;;  %365 = vst.msk [vmem:[%s1450_s29 + $0x20] sm:$0xff] %vm360_vm5, %v316_v47 }
 0x120   : > { %v349_v48 = vpop.trf.xlu1  ;;  %v317_v49 = vpop.trf.xlu0 }
 0x121   : > { %382 = vst.msk [vmem:[%s1450_s29 + $0xa8] sm:$0xff] %vm360_vm5, %v349_v48  ;;  %366 = vst.msk [vmem:[%s1450_s29 + $0x28] sm:$0xff] %vm360_vm5, %v317_v49 }
 0x124   : > { %v350_v50 = vpop.trf.xlu1  ;;  %v318_v51 = vpop.trf.xlu0 }
 0x125   : > { %383 = vst.msk [vmem:[%s1450_s29 + $0xb0] sm:$0xff] %vm360_vm5, %v350_v50  ;;  %367 = vst.msk [vmem:[%s1450_s29 + $0x30] sm:$0xff] %vm360_vm5, %v318_v51 }
 0x128   : > { %v351_v52 = vpop.trf.xlu1  ;;  %v319_v53 = vpop.trf.xlu0 }
 0x129   : > { %384 = vst.msk [vmem:[%s1450_s29 + $0xb8] sm:$0xff] %vm360_vm5, %v351_v52  ;;  %368 = vst.msk [vmem:[%s1450_s29 + $0x38] sm:$0xff] %vm360_vm5, %v319_v53 }
 0x12c   : > { %v352_v54 = vpop.trf.xlu1  ;;  %v320_v55 = vpop.trf.xlu0 }
 0x12d   : > { %385 = vst.msk [vmem:[%s1450_s29 + $0xc0] sm:$0xff] %vm360_vm5, %v352_v54  ;;  %369 = vst.msk [vmem:[%s1450_s29 + $0x40] sm:$0xff] %vm360_vm5, %v320_v55 }
 0x130   : > { %v353_v56 = vpop.trf.xlu1  ;;  %v321_v57 = vpop.trf.xlu0 }
 0x131   : > { %386 = vst.msk [vmem:[%s1450_s29 + $0xc8] sm:$0xff] %vm360_vm5, %v353_v56  ;;  %370 = vst.msk [vmem:[%s1450_s29 + $0x48] sm:$0xff] %vm360_vm5, %v321_v57 }
 0x134   : > { %v354_v58 = vpop.trf.xlu1  ;;  %v322_v59 = vpop.trf.xlu0 }
 0x135   : > { %387 = vst.msk [vmem:[%s1450_s29 + $0xd0] sm:$0xff] %vm360_vm5, %v354_v58  ;;  %371 = vst.msk [vmem:[%s1450_s29 + $0x50] sm:$0xff] %vm360_vm5, %v322_v59 }
 0x138   : > { %v355_v60 = vpop.trf.xlu1  ;;  %v323_v61 = vpop.trf.xlu0 }
 0x139   : > { %388 = vst.msk [vmem:[%s1450_s29 + $0xd8] sm:$0xff] %vm360_vm5, %v355_v60  ;;  %372 = vst.msk [vmem:[%s1450_s29 + $0x58] sm:$0xff] %vm360_vm5, %v323_v61 }
 0x13c   : > { %v356_v62 = vpop.trf.xlu1  ;;  %v324_v63 = vpop.trf.xlu0 }
 0x13d   : > { %389 = vst.msk [vmem:[%s1450_s29 + $0xe0] sm:$0xff] %vm360_vm5, %v356_v62  ;;  %373 = vst.msk [vmem:[%s1450_s29 + $0x60] sm:$0xff] %vm360_vm5, %v324_v63 }
 0x140   : > { %v357_v0 = vpop.trf.xlu1  ;;  %v325_v1 = vpop.trf.xlu0 }
 0x141   : > { %390 = vst.msk [vmem:[%s1450_s29 + $0xe8] sm:$0xff] %vm360_vm5, %v357_v0  ;;  %374 = vst.msk [vmem:[%s1450_s29 + $0x68] sm:$0xff] %vm360_vm5, %v325_v1 }
 0x144   : > { %v358_v2 = vpop.trf.xlu1  ;;  %v326_v3 = vpop.trf.xlu0  ;;  %654 = vxpose.xlu1.b32.start.end [1/1] (short) %v1387_v9, 128  ;;  %622 = vxpose.xlu0.b32.start.end [1/1] (short) %v1384_v7, 128 }
 0x145   : > { %391 = vst.msk [vmem:[%s1450_s29 + $0xf0] sm:$0xff] %vm360_vm5, %v358_v2  ;;  %375 = vst.msk [vmem:[%s1450_s29 + $0x70] sm:$0xff] %vm360_vm5, %v326_v3 }
 0x148   : > { %v359_v6 = vpop.trf.xlu1  ;;  %v327_v8 = vpop.trf.xlu0 }
 0x149   : > { %392 = vst.msk [vmem:[%s1450_s29 + $0xf8] sm:$0xff] %vm360_vm5, %v359_v6  ;;  %376 = vst.msk [vmem:[%s1450_s29 + $0x78] sm:$0xff] %vm360_vm5, %v327_v8 }
 0x14c   : > { %v409_v7 = vpop.trf.xlu1  ;;  %v441_v9 = vpop.trf.xlu0 }
 0x14d   : > { %457 = vst.msk [vmem:[%s1523_s5] sm:$0xff] %vm360_vm5, %v409_v7  ;;  %473 = vst.msk [vmem:[%s1523_s5 + $0x80] sm:$0xff] %vm360_vm5, %v441_v9 }
 0x150   : > { %v410_v10 = vpop.trf.xlu1  ;;  %v442_v13 = vpop.trf.xlu0 }
 0x151   : > { %458 = vst.msk [vmem:[%s1523_s5 + $0x8] sm:$0xff] %vm360_vm5, %v410_v10  ;;  %474 = vst.msk [vmem:[%s1523_s5 + $0x88] sm:$0xff] %vm360_vm5, %v442_v13 }
 0x154   : > { %v411_v14 = vpop.trf.xlu1  ;;  %v443_v15 = vpop.trf.xlu0 }
 0x155   : > { %459 = vst.msk [vmem:[%s1523_s5 + $0x10] sm:$0xff] %vm360_vm5, %v411_v14  ;;  %475 = vst.msk [vmem:[%s1523_s5 + $0x90] sm:$0xff] %vm360_vm5, %v443_v15 }
 0x158   : > { %v412_v16 = vpop.trf.xlu1  ;;  %v444_v17 = vpop.trf.xlu0 }
 0x159   : > { %460 = vst.msk [vmem:[%s1523_s5 + $0x18] sm:$0xff] %vm360_vm5, %v412_v16  ;;  %476 = vst.msk [vmem:[%s1523_s5 + $0x98] sm:$0xff] %vm360_vm5, %v444_v17 }
 0x15c   : > { %v413_v18 = vpop.trf.xlu1  ;;  %v445_v19 = vpop.trf.xlu0 }
 0x15d   : > { %461 = vst.msk [vmem:[%s1523_s5 + $0x20] sm:$0xff] %vm360_vm5, %v413_v18  ;;  %477 = vst.msk [vmem:[%s1523_s5 + $0xa0] sm:$0xff] %vm360_vm5, %v445_v19 }
 0x160   : > { %v414_v20 = vpop.trf.xlu1  ;;  %v446_v21 = vpop.trf.xlu0 }
 0x161   : > { %462 = vst.msk [vmem:[%s1523_s5 + $0x28] sm:$0xff] %vm360_vm5, %v414_v20  ;;  %478 = vst.msk [vmem:[%s1523_s5 + $0xa8] sm:$0xff] %vm360_vm5, %v446_v21 }
 0x164   : > { %v415_v22 = vpop.trf.xlu1  ;;  %v447_v23 = vpop.trf.xlu0 }
 0x165   : > { %463 = vst.msk [vmem:[%s1523_s5 + $0x30] sm:$0xff] %vm360_vm5, %v415_v22  ;;  %479 = vst.msk [vmem:[%s1523_s5 + $0xb0] sm:$0xff] %vm360_vm5, %v447_v23 }
 0x168   : > { %v416_v24 = vpop.trf.xlu1  ;;  %v448_v25 = vpop.trf.xlu0 }
 0x169   : > { %464 = vst.msk [vmem:[%s1523_s5 + $0x38] sm:$0xff] %vm360_vm5, %v416_v24  ;;  %480 = vst.msk [vmem:[%s1523_s5 + $0xb8] sm:$0xff] %vm360_vm5, %v448_v25 }
 0x16c   : > { %v417_v26 = vpop.trf.xlu1  ;;  %v449_v27 = vpop.trf.xlu0 }
 0x16d   : > { %465 = vst.msk [vmem:[%s1523_s5 + $0x40] sm:$0xff] %vm360_vm5, %v417_v26  ;;  %481 = vst.msk [vmem:[%s1523_s5 + $0xc0] sm:$0xff] %vm360_vm5, %v449_v27 }
 0x170   : > { %v418_v28 = vpop.trf.xlu1  ;;  %v450_v29 = vpop.trf.xlu0 }
 0x171   : > { %466 = vst.msk [vmem:[%s1523_s5 + $0x48] sm:$0xff] %vm360_vm5, %v418_v28  ;;  %482 = vst.msk [vmem:[%s1523_s5 + $0xc8] sm:$0xff] %vm360_vm5, %v450_v29 }
 0x174   : > { %v419_v30 = vpop.trf.xlu1  ;;  %v451_v31 = vpop.trf.xlu0 }
 0x175   : > { %467 = vst.msk [vmem:[%s1523_s5 + $0x50] sm:$0xff] %vm360_vm5, %v419_v30  ;;  %483 = vst.msk [vmem:[%s1523_s5 + $0xd0] sm:$0xff] %vm360_vm5, %v451_v31 }
 0x178   : > { %v420_v32 = vpop.trf.xlu1  ;;  %v452_v33 = vpop.trf.xlu0 }
 0x179   : > { %468 = vst.msk [vmem:[%s1523_s5 + $0x58] sm:$0xff] %vm360_vm5, %v420_v32  ;;  %484 = vst.msk [vmem:[%s1523_s5 + $0xd8] sm:$0xff] %vm360_vm5, %v452_v33 }
 0x17c   : > { %v421_v34 = vpop.trf.xlu1  ;;  %v453_v35 = vpop.trf.xlu0 }
 0x17d   : > { %469 = vst.msk [vmem:[%s1523_s5 + $0x60] sm:$0xff] %vm360_vm5, %v421_v34  ;;  %485 = vst.msk [vmem:[%s1523_s5 + $0xe0] sm:$0xff] %vm360_vm5, %v453_v35 }
 0x180   : > { %v422_v36 = vpop.trf.xlu1  ;;  %v454_v37 = vpop.trf.xlu0 }
 0x181   : > { %470 = vst.msk [vmem:[%s1523_s5 + $0x68] sm:$0xff] %vm360_vm5, %v422_v36  ;;  %486 = vst.msk [vmem:[%s1523_s5 + $0xe8] sm:$0xff] %vm360_vm5, %v454_v37 }
 0x184   : > { %v423_v4 = vpop.trf.xlu1  ;;  %755 = vxpose.xlu1.b32.start.end [1/1] (short) %v1436_v38, 128  ;;  %v455_v5 = vpop.trf.xlu0  ;;  %787 = vxpose.xlu0.b32.start.end [1/1] (short) %v1440_v39, 128 }
 0x185   : > { %471 = vst.msk [vmem:[%s1523_s5 + $0x70] sm:$0xff] %vm360_vm5, %v423_v4  ;;  %487 = vst.msk [vmem:[%s1523_s5 + $0xf0] sm:$0xff] %vm360_vm5, %v455_v5 }
 0x188   : > { %v424_v40 = vpop.trf.xlu1  ;;  %v456_v41 = vpop.trf.xlu0 }
 0x189   : > { %472 = vst.msk [vmem:[%s1523_s5 + $0x78] sm:$0xff] %vm360_vm5, %v424_v40  ;;  %488 = vst.msk [vmem:[%s1523_s5 + $0xf8] sm:$0xff] %vm360_vm5, %v456_v41 }
 0x18c   : > { %v573_v42 = vpop.trf.xlu1  ;;  %v541_v38 = vpop.trf.xlu0 }
 0x18d   : > { %1117 = vst.msk [vmem:[%s1450_s29 + $0x180] sm:$0xff] %vm360_vm5, %v573_v42  ;;  %1101 = vst.msk [vmem:[%s1450_s29 + $0x100] sm:$0xff] %vm360_vm5, %v541_v38 }
 0x190   : > { %v574_v39 = vpop.trf.xlu1  ;;  %v542_v43 = vpop.trf.xlu0 }
 0x191   : > { %1118 = vst.msk [vmem:[%s1450_s29 + $0x188] sm:$0xff] %vm360_vm5, %v574_v39  ;;  %1102 = vst.msk [vmem:[%s1450_s29 + $0x108] sm:$0xff] %vm360_vm5, %v542_v43 }
 0x194   : > { %v575_v44 = vpop.trf.xlu1  ;;  %v543_v45 = vpop.trf.xlu0 }
 0x195   : > { %1119 = vst.msk [vmem:[%s1450_s29 + $0x190] sm:$0xff] %vm360_vm5, %v575_v44  ;;  %1103 = vst.msk [vmem:[%s1450_s29 + $0x110] sm:$0xff] %vm360_vm5, %v543_v45 }
 0x198   : > { %v576_v46 = vpop.trf.xlu1  ;;  %v544_v47 = vpop.trf.xlu0 }
 0x199   : > { %1120 = vst.msk [vmem:[%s1450_s29 + $0x198] sm:$0xff] %vm360_vm5, %v576_v46  ;;  %1104 = vst.msk [vmem:[%s1450_s29 + $0x118] sm:$0xff] %vm360_vm5, %v544_v47 }
 0x19c   : > { %v577_v48 = vpop.trf.xlu1  ;;  %v545_v49 = vpop.trf.xlu0 }
 0x19d   : > { %1121 = vst.msk [vmem:[%s1450_s29 + $0x1a0] sm:$0xff] %vm360_vm5, %v577_v48  ;;  %1105 = vst.msk [vmem:[%s1450_s29 + $0x120] sm:$0xff] %vm360_vm5, %v545_v49 }
 0x1a0   : > { %v578_v50 = vpop.trf.xlu1  ;;  %v546_v51 = vpop.trf.xlu0 }
 0x1a1   : > { %1122 = vst.msk [vmem:[%s1450_s29 + $0x1a8] sm:$0xff] %vm360_vm5, %v578_v50  ;;  %1106 = vst.msk [vmem:[%s1450_s29 + $0x128] sm:$0xff] %vm360_vm5, %v546_v51 }
 0x1a4   : > { %v579_v52 = vpop.trf.xlu1  ;;  %v547_v53 = vpop.trf.xlu0 }
 0x1a5   : > { %1123 = vst.msk [vmem:[%s1450_s29 + $0x1b0] sm:$0xff] %vm360_vm5, %v579_v52  ;;  %1107 = vst.msk [vmem:[%s1450_s29 + $0x130] sm:$0xff] %vm360_vm5, %v547_v53 }
 0x1a8   : > { %v580_v54 = vpop.trf.xlu1  ;;  %v548_v55 = vpop.trf.xlu0 }
 0x1a9   : > { %1124 = vst.msk [vmem:[%s1450_s29 + $0x1b8] sm:$0xff] %vm360_vm5, %v580_v54  ;;  %1108 = vst.msk [vmem:[%s1450_s29 + $0x138] sm:$0xff] %vm360_vm5, %v548_v55 }
 0x1ac   : > { %v581_v56 = vpop.trf.xlu1  ;;  %v549_v57 = vpop.trf.xlu0 }
 0x1ad   : > { %1125 = vst.msk [vmem:[%s1450_s29 + $0x1c0] sm:$0xff] %vm360_vm5, %v581_v56  ;;  %1109 = vst.msk [vmem:[%s1450_s29 + $0x140] sm:$0xff] %vm360_vm5, %v549_v57 }
 0x1b0   : > { %v582_v58 = vpop.trf.xlu1  ;;  %v550_v59 = vpop.trf.xlu0 }
 0x1b1   : > { %1126 = vst.msk [vmem:[%s1450_s29 + $0x1c8] sm:$0xff] %vm360_vm5, %v582_v58  ;;  %1110 = vst.msk [vmem:[%s1450_s29 + $0x148] sm:$0xff] %vm360_vm5, %v550_v59 }
 0x1b4   : > { %v583_v60 = vpop.trf.xlu1  ;;  %v551_v61 = vpop.trf.xlu0 }
 0x1b5   : > { %1127 = vst.msk [vmem:[%s1450_s29 + $0x1d0] sm:$0xff] %vm360_vm5, %v583_v60  ;;  %1111 = vst.msk [vmem:[%s1450_s29 + $0x150] sm:$0xff] %vm360_vm5, %v551_v61 }
 0x1b8   : > { %v584_v62 = vpop.trf.xlu1  ;;  %v552_v63 = vpop.trf.xlu0 }
 0x1b9   : > { %1128 = vst.msk [vmem:[%s1450_s29 + $0x1d8] sm:$0xff] %vm360_vm5, %v584_v62  ;;  %1112 = vst.msk [vmem:[%s1450_s29 + $0x158] sm:$0xff] %vm360_vm5, %v552_v63 }
 0x1bc   : > { %v585_v0 = vpop.trf.xlu1  ;;  %v553_v1 = vpop.trf.xlu0 }
 0x1bd   : > { %1129 = vst.msk [vmem:[%s1450_s29 + $0x1e0] sm:$0xff] %vm360_vm5, %v585_v0  ;;  %1113 = vst.msk [vmem:[%s1450_s29 + $0x160] sm:$0xff] %vm360_vm5, %v553_v1 }
 0x1c0   : > { %v586_v2 = vpop.trf.xlu1  ;;  %v554_v3 = vpop.trf.xlu0 }
 0x1c1   : > { %1130 = vst.msk [vmem:[%s1450_s29 + $0x1e8] sm:$0xff] %vm360_vm5, %v586_v2  ;;  %1114 = vst.msk [vmem:[%s1450_s29 + $0x168] sm:$0xff] %vm360_vm5, %v554_v3 }
 0x1c4   : > { %v587_v6 = vpop.trf.xlu1  ;;  %v555_v8 = vpop.trf.xlu0  ;;  %852 = vxpose.xlu1.b32.start.end [1/1] (short) %v1390_v11, 128  ;;  %884 = vxpose.xlu0.b32.start.end [1/1] (short) %v1392_v12, 128 }
 0x1c5   : > { %1131 = vst.msk [vmem:[%s1450_s29 + $0x1f0] sm:$0xff] %vm360_vm5, %v587_v6  ;;  %1115 = vst.msk [vmem:[%s1450_s29 + $0x170] sm:$0xff] %vm360_vm5, %v555_v8 }
 0x1c8   : > { %v588_v7 = vpop.trf.xlu1  ;;  %v556_v9 = vpop.trf.xlu0 }
 0x1c9   : > { %1132 = vst.msk [vmem:[%s1450_s29 + $0x1f8] sm:$0xff] %vm360_vm5, %v588_v7  ;;  %1116 = vst.msk [vmem:[%s1450_s29 + $0x178] sm:$0xff] %vm360_vm5, %v556_v9 }
 0x1cc   : > { %v670_v10 = vpop.trf.xlu1  ;;  %v638_v13 = vpop.trf.xlu0 }
 0x1cd   : > { %1149 = vst.msk [vmem:[%s1523_s5 + $0x180] sm:$0xff] %vm360_vm5, %v670_v10  ;;  %1133 = vst.msk [vmem:[%s1523_s5 + $0x100] sm:$0xff] %vm360_vm5, %v638_v13 }
 0x1d0   : > { %v671_v11 = vpop.trf.xlu1  ;;  %v639_v12 = vpop.trf.xlu0 }
 0x1d1   : > { %1150 = vst.msk [vmem:[%s1523_s5 + $0x188] sm:$0xff] %vm360_vm5, %v671_v11  ;;  %1134 = vst.msk [vmem:[%s1523_s5 + $0x108] sm:$0xff] %vm360_vm5, %v639_v12 }
 0x1d4   : > { %v672_v14 = vpop.trf.xlu1  ;;  %v640_v15 = vpop.trf.xlu0 }
 0x1d5   : > { %1151 = vst.msk [vmem:[%s1523_s5 + $0x190] sm:$0xff] %vm360_vm5, %v672_v14  ;;  %1135 = vst.msk [vmem:[%s1523_s5 + $0x110] sm:$0xff] %vm360_vm5, %v640_v15 }
 0x1d8   : > { %v673_v16 = vpop.trf.xlu1  ;;  %v641_v17 = vpop.trf.xlu0 }
 0x1d9   : > { %1152 = vst.msk [vmem:[%s1523_s5 + $0x198] sm:$0xff] %vm360_vm5, %v673_v16  ;;  %1136 = vst.msk [vmem:[%s1523_s5 + $0x118] sm:$0xff] %vm360_vm5, %v641_v17 }
 0x1dc   : > { %v674_v18 = vpop.trf.xlu1  ;;  %v642_v19 = vpop.trf.xlu0 }
 0x1dd   : > { %1153 = vst.msk [vmem:[%s1523_s5 + $0x1a0] sm:$0xff] %vm360_vm5, %v674_v18  ;;  %1137 = vst.msk [vmem:[%s1523_s5 + $0x120] sm:$0xff] %vm360_vm5, %v642_v19 }
 0x1e0   : > { %v675_v20 = vpop.trf.xlu1  ;;  %v643_v21 = vpop.trf.xlu0 }
 0x1e1   : > { %1154 = vst.msk [vmem:[%s1523_s5 + $0x1a8] sm:$0xff] %vm360_vm5, %v675_v20  ;;  %1138 = vst.msk [vmem:[%s1523_s5 + $0x128] sm:$0xff] %vm360_vm5, %v643_v21 }
 0x1e4   : > { %v676_v22 = vpop.trf.xlu1  ;;  %v644_v23 = vpop.trf.xlu0 }
 0x1e5   : > { %1155 = vst.msk [vmem:[%s1523_s5 + $0x1b0] sm:$0xff] %vm360_vm5, %v676_v22  ;;  %1139 = vst.msk [vmem:[%s1523_s5 + $0x130] sm:$0xff] %vm360_vm5, %v644_v23 }
 0x1e8   : > { %v677_v24 = vpop.trf.xlu1  ;;  %v645_v25 = vpop.trf.xlu0 }
 0x1e9   : > { %1156 = vst.msk [vmem:[%s1523_s5 + $0x1b8] sm:$0xff] %vm360_vm5, %v677_v24  ;;  %1140 = vst.msk [vmem:[%s1523_s5 + $0x138] sm:$0xff] %vm360_vm5, %v645_v25 }
 0x1ec   : > { %v678_v26 = vpop.trf.xlu1  ;;  %v646_v27 = vpop.trf.xlu0 }
 0x1ed   : > { %1157 = vst.msk [vmem:[%s1523_s5 + $0x1c0] sm:$0xff] %vm360_vm5, %v678_v26  ;;  %1141 = vst.msk [vmem:[%s1523_s5 + $0x140] sm:$0xff] %vm360_vm5, %v646_v27 }
 0x1f0   : > { %v679_v28 = vpop.trf.xlu1  ;;  %v647_v29 = vpop.trf.xlu0 }
 0x1f1   : > { %1158 = vst.msk [vmem:[%s1523_s5 + $0x1c8] sm:$0xff] %vm360_vm5, %v679_v28  ;;  %1142 = vst.msk [vmem:[%s1523_s5 + $0x148] sm:$0xff] %vm360_vm5, %v647_v29 }
 0x1f4   : > { %v680_v30 = vpop.trf.xlu1  ;;  %v648_v31 = vpop.trf.xlu0 }
 0x1f5   : > { %1159 = vst.msk [vmem:[%s1523_s5 + $0x1d0] sm:$0xff] %vm360_vm5, %v680_v30  ;;  %1143 = vst.msk [vmem:[%s1523_s5 + $0x150] sm:$0xff] %vm360_vm5, %v648_v31 }
 0x1f8   : > { %v681_v32 = vpop.trf.xlu1  ;;  %v649_v33 = vpop.trf.xlu0 }
 0x1f9   : > { %1160 = vst.msk [vmem:[%s1523_s5 + $0x1d8] sm:$0xff] %vm360_vm5, %v681_v32  ;;  %1144 = vst.msk [vmem:[%s1523_s5 + $0x158] sm:$0xff] %vm360_vm5, %v649_v33 }
 0x1fc   : > { %v682_v34 = vpop.trf.xlu1  ;;  %v650_v35 = vpop.trf.xlu0 }
 0x1fd   : > { %1161 = vst.msk [vmem:[%s1523_s5 + $0x1e0] sm:$0xff] %vm360_vm5, %v682_v34  ;;  %1145 = vst.msk [vmem:[%s1523_s5 + $0x160] sm:$0xff] %vm360_vm5, %v650_v35 }
 0x200   : > { %v683_v36 = vpop.trf.xlu1  ;;  %v651_v37 = vpop.trf.xlu0 }
 0x201   : > { %1162 = vst.msk [vmem:[%s1523_s5 + $0x1e8] sm:$0xff] %vm360_vm5, %v683_v36  ;;  %1146 = vst.msk [vmem:[%s1523_s5 + $0x168] sm:$0xff] %vm360_vm5, %v651_v37 }
 0x204   : > { %v684_v4 = vpop.trf.xlu1  ;;  %v652_v5 = vpop.trf.xlu0 }
 0x205   : > { %1163 = vst.msk [vmem:[%s1523_s5 + $0x1f0] sm:$0xff] %vm360_vm5, %v684_v4  ;;  %1147 = vst.msk [vmem:[%s1523_s5 + $0x170] sm:$0xff] %vm360_vm5, %v652_v5 }
 0x208   : > { %v685_v40 = vpop.trf.xlu1  ;;  %v653_v41 = vpop.trf.xlu0 }
 0x209   : > { %1164 = vst.msk [vmem:[%s1523_s5 + $0x1f8] sm:$0xff] %vm360_vm5, %v685_v40  ;;  %1148 = vst.msk [vmem:[%s1523_s5 + $0x178] sm:$0xff] %vm360_vm5, %v653_v41 }
 0x20c   : > { %v771_v42 = vpop.trf.xlu1  ;;  %v803_v38 = vpop.trf.xlu0 }
 0x20d   : > { %1170 = vst.msk [vmem:[%s1450_s29 + $0x200] sm:$0xff] %vm360_vm5, %v771_v42  ;;  %1186 = vst.msk [vmem:[%s1450_s29 + $0x280] sm:$0xff] %vm360_vm5, %v803_v38 }
 0x210   : > { %v772_v39 = vpop.trf.xlu1  ;;  %v804_v43 = vpop.trf.xlu0 }
 0x211   : > { %1171 = vst.msk [vmem:[%s1450_s29 + $0x208] sm:$0xff] %vm360_vm5, %v772_v39  ;;  %1187 = vst.msk [vmem:[%s1450_s29 + $0x288] sm:$0xff] %vm360_vm5, %v804_v43 }
 0x214   : > { %v773_v44 = vpop.trf.xlu1  ;;  %v805_v45 = vpop.trf.xlu0 }
 0x215   : > { %1172 = vst.msk [vmem:[%s1450_s29 + $0x210] sm:$0xff] %vm360_vm5, %v773_v44  ;;  %1188 = vst.msk [vmem:[%s1450_s29 + $0x290] sm:$0xff] %vm360_vm5, %v805_v45 }
 0x218   : > { %v774_v46 = vpop.trf.xlu1  ;;  %v806_v47 = vpop.trf.xlu0 }
 0x219   : > { %1173 = vst.msk [vmem:[%s1450_s29 + $0x218] sm:$0xff] %vm360_vm5, %v774_v46  ;;  %1189 = vst.msk [vmem:[%s1450_s29 + $0x298] sm:$0xff] %vm360_vm5, %v806_v47 }
 0x21c   : > { %v775_v48 = vpop.trf.xlu1  ;;  %v807_v49 = vpop.trf.xlu0 }
 0x21d   : > { %1174 = vst.msk [vmem:[%s1450_s29 + $0x220] sm:$0xff] %vm360_vm5, %v775_v48  ;;  %1190 = vst.msk [vmem:[%s1450_s29 + $0x2a0] sm:$0xff] %vm360_vm5, %v807_v49 }
 0x220   : > { %v776_v50 = vpop.trf.xlu1  ;;  %v808_v51 = vpop.trf.xlu0 }
 0x221   : > { %1175 = vst.msk [vmem:[%s1450_s29 + $0x228] sm:$0xff] %vm360_vm5, %v776_v50  ;;  %1191 = vst.msk [vmem:[%s1450_s29 + $0x2a8] sm:$0xff] %vm360_vm5, %v808_v51 }
 0x224   : > { %v777_v52 = vpop.trf.xlu1  ;;  %v809_v53 = vpop.trf.xlu0 }
 0x225   : > { %1176 = vst.msk [vmem:[%s1450_s29 + $0x230] sm:$0xff] %vm360_vm5, %v777_v52  ;;  %1192 = vst.msk [vmem:[%s1450_s29 + $0x2b0] sm:$0xff] %vm360_vm5, %v809_v53 }
 0x228   : > { %v778_v54 = vpop.trf.xlu1  ;;  %v810_v55 = vpop.trf.xlu0 }
 0x229   : > { %1177 = vst.msk [vmem:[%s1450_s29 + $0x238] sm:$0xff] %vm360_vm5, %v778_v54  ;;  %1193 = vst.msk [vmem:[%s1450_s29 + $0x2b8] sm:$0xff] %vm360_vm5, %v810_v55 }
 0x22c   : > { %v779_v56 = vpop.trf.xlu1  ;;  %v811_v57 = vpop.trf.xlu0 }
 0x22d   : > { %1178 = vst.msk [vmem:[%s1450_s29 + $0x240] sm:$0xff] %vm360_vm5, %v779_v56  ;;  %1194 = vst.msk [vmem:[%s1450_s29 + $0x2c0] sm:$0xff] %vm360_vm5, %v811_v57 }
 0x230   : > { %v780_v58 = vpop.trf.xlu1  ;;  %v812_v59 = vpop.trf.xlu0 }
 0x231   : > { %1179 = vst.msk [vmem:[%s1450_s29 + $0x248] sm:$0xff] %vm360_vm5, %v780_v58  ;;  %1195 = vst.msk [vmem:[%s1450_s29 + $0x2c8] sm:$0xff] %vm360_vm5, %v812_v59 }
 0x234   : > { %v781_v60 = vpop.trf.xlu1  ;;  %v813_v61 = vpop.trf.xlu0 }
 0x235   : > { %1180 = vst.msk [vmem:[%s1450_s29 + $0x250] sm:$0xff] %vm360_vm5, %v781_v60  ;;  %1196 = vst.msk [vmem:[%s1450_s29 + $0x2d0] sm:$0xff] %vm360_vm5, %v813_v61 }
 0x238   : > { %v782_v62 = vpop.trf.xlu1  ;;  %v814_v63 = vpop.trf.xlu0 }
 0x239   : > { %1181 = vst.msk [vmem:[%s1450_s29 + $0x258] sm:$0xff] %vm360_vm5, %v782_v62  ;;  %1197 = vst.msk [vmem:[%s1450_s29 + $0x2d8] sm:$0xff] %vm360_vm5, %v814_v63 }
 0x23c   : > { %v783_v0 = vpop.trf.xlu1  ;;  %v815_v1 = vpop.trf.xlu0 }
 0x23d   : > { %1182 = vst.msk [vmem:[%s1450_s29 + $0x260] sm:$0xff] %vm360_vm5, %v783_v0  ;;  %1198 = vst.msk [vmem:[%s1450_s29 + $0x2e0] sm:$0xff] %vm360_vm5, %v815_v1 }
 0x240   : > { %v784_v2 = vpop.trf.xlu1  ;;  %v816_v3 = vpop.trf.xlu0 }
 0x241   : > { %1183 = vst.msk [vmem:[%s1450_s29 + $0x268] sm:$0xff] %vm360_vm5, %v784_v2  ;;  %1199 = vst.msk [vmem:[%s1450_s29 + $0x2e8] sm:$0xff] %vm360_vm5, %v816_v3 }
 0x244   : > { %v785_v6 = vpop.trf.xlu1  ;;  %v817_v8 = vpop.trf.xlu0 }
 0x245   : > { %1184 = vst.msk [vmem:[%s1450_s29 + $0x270] sm:$0xff] %vm360_vm5, %v785_v6  ;;  %1200 = vst.msk [vmem:[%s1450_s29 + $0x2f0] sm:$0xff] %vm360_vm5, %v817_v8 }
 0x248   : > { %v786_v7 = vpop.trf.xlu1  ;;  %v818_v9 = vpop.trf.xlu0 }
 0x249   : > { %1185 = vst.msk [vmem:[%s1450_s29 + $0x278] sm:$0xff] %vm360_vm5, %v786_v7  ;;  %1201 = vst.msk [vmem:[%s1450_s29 + $0x2f8] sm:$0xff] %vm360_vm5, %v818_v9 }
 0x24c   : > { %v868_v10 = vpop.trf.xlu1  ;;  %v900_v13 = vpop.trf.xlu0 }
 0x24d   : > { %1202 = vst.msk [vmem:[%s1523_s5 + $0x200] sm:$0xff] %vm360_vm5, %v868_v10  ;;  %1218 = vst.msk [vmem:[%s1523_s5 + $0x280] sm:$0xff] %vm360_vm5, %v900_v13 }
 0x250   : > { %v869_v11 = vpop.trf.xlu1  ;;  %v901_v12 = vpop.trf.xlu0 }
 0x251   : > { %1203 = vst.msk [vmem:[%s1523_s5 + $0x208] sm:$0xff] %vm360_vm5, %v869_v11  ;;  %1219 = vst.msk [vmem:[%s1523_s5 + $0x288] sm:$0xff] %vm360_vm5, %v901_v12 }
 0x254   : > { %v870_v14 = vpop.trf.xlu1  ;;  %v902_v15 = vpop.trf.xlu0 }
 0x255   : > { %1204 = vst.msk [vmem:[%s1523_s5 + $0x210] sm:$0xff] %vm360_vm5, %v870_v14  ;;  %1220 = vst.msk [vmem:[%s1523_s5 + $0x290] sm:$0xff] %vm360_vm5, %v902_v15 }
 0x258   : > { %v871_v16 = vpop.trf.xlu1  ;;  %v903_v17 = vpop.trf.xlu0 }
 0x259   : > { %1205 = vst.msk [vmem:[%s1523_s5 + $0x218] sm:$0xff] %vm360_vm5, %v871_v16  ;;  %1221 = vst.msk [vmem:[%s1523_s5 + $0x298] sm:$0xff] %vm360_vm5, %v903_v17 }
 0x25c   : > { %v872_v18 = vpop.trf.xlu1  ;;  %v904_v19 = vpop.trf.xlu0 }
 0x25d   : > { %1206 = vst.msk [vmem:[%s1523_s5 + $0x220] sm:$0xff] %vm360_vm5, %v872_v18  ;;  %1222 = vst.msk [vmem:[%s1523_s5 + $0x2a0] sm:$0xff] %vm360_vm5, %v904_v19 }
 0x260   : > { %v873_v20 = vpop.trf.xlu1  ;;  %v905_v21 = vpop.trf.xlu0 }
 0x261   : > { %1207 = vst.msk [vmem:[%s1523_s5 + $0x228] sm:$0xff] %vm360_vm5, %v873_v20  ;;  %1223 = vst.msk [vmem:[%s1523_s5 + $0x2a8] sm:$0xff] %vm360_vm5, %v905_v21 }
 0x264   : > { %v874_v22 = vpop.trf.xlu1  ;;  %v906_v23 = vpop.trf.xlu0 }
 0x265   : > { %1208 = vst.msk [vmem:[%s1523_s5 + $0x230] sm:$0xff] %vm360_vm5, %v874_v22  ;;  %1224 = vst.msk [vmem:[%s1523_s5 + $0x2b0] sm:$0xff] %vm360_vm5, %v906_v23 }
 0x268   : > { %v875_v24 = vpop.trf.xlu1  ;;  %v907_v25 = vpop.trf.xlu0 }
 0x269   : > { %1209 = vst.msk [vmem:[%s1523_s5 + $0x238] sm:$0xff] %vm360_vm5, %v875_v24  ;;  %1225 = vst.msk [vmem:[%s1523_s5 + $0x2b8] sm:$0xff] %vm360_vm5, %v907_v25 }
 0x26c   : > { %v876_v26 = vpop.trf.xlu1  ;;  %v908_v27 = vpop.trf.xlu0 }
 0x26d   : > { %1210 = vst.msk [vmem:[%s1523_s5 + $0x240] sm:$0xff] %vm360_vm5, %v876_v26  ;;  %1226 = vst.msk [vmem:[%s1523_s5 + $0x2c0] sm:$0xff] %vm360_vm5, %v908_v27 }
 0x270   : > { %v877_v28 = vpop.trf.xlu1  ;;  %v909_v29 = vpop.trf.xlu0 }
 0x271   : > { %1211 = vst.msk [vmem:[%s1523_s5 + $0x248] sm:$0xff] %vm360_vm5, %v877_v28  ;;  %1227 = vst.msk [vmem:[%s1523_s5 + $0x2c8] sm:$0xff] %vm360_vm5, %v909_v29 }
 0x274   : > { %v878_v30 = vpop.trf.xlu1  ;;  %v910_v31 = vpop.trf.xlu0 }
 0x275   : > { %1212 = vst.msk [vmem:[%s1523_s5 + $0x250] sm:$0xff] %vm360_vm5, %v878_v30  ;;  %1228 = vst.msk [vmem:[%s1523_s5 + $0x2d0] sm:$0xff] %vm360_vm5, %v910_v31 }
 0x278   : > { %v879_v32 = vpop.trf.xlu1  ;;  %v911_v33 = vpop.trf.xlu0 }
 0x279   : > { %1213 = vst.msk [vmem:[%s1523_s5 + $0x258] sm:$0xff] %vm360_vm5, %v879_v32  ;;  %1229 = vst.msk [vmem:[%s1523_s5 + $0x2d8] sm:$0xff] %vm360_vm5, %v911_v33 }
 0x27c   : > { %v880_v34 = vpop.trf.xlu1  ;;  %v912_v35 = vpop.trf.xlu0 }
 0x27d   : > { %1214 = vst.msk [vmem:[%s1523_s5 + $0x260] sm:$0xff] %vm360_vm5, %v880_v34  ;;  %1230 = vst.msk [vmem:[%s1523_s5 + $0x2e0] sm:$0xff] %vm360_vm5, %v912_v35 }
 0x280   : > { %v881_v36 = vpop.trf.xlu1  ;;  %v913_v37 = vpop.trf.xlu0 }
 0x281   : > { %1215 = vst.msk [vmem:[%s1523_s5 + $0x268] sm:$0xff] %vm360_vm5, %v881_v36  ;;  %1231 = vst.msk [vmem:[%s1523_s5 + $0x2e8] sm:$0xff] %vm360_vm5, %v913_v37 }
 0x284   : > { %v882_v4 = vpop.trf.xlu1  ;;  %v914_v5 = vpop.trf.xlu0 }
 0x285   : > { %1216 = vst.msk [vmem:[%s1523_s5 + $0x270] sm:$0xff] %vm360_vm5, %v882_v4  ;;  %1232 = vst.msk [vmem:[%s1523_s5 + $0x2f0] sm:$0xff] %vm360_vm5, %v914_v5 }
 0x288   : > { %v883_v40 = vpop.trf.xlu1  ;;  %v915_v41 = vpop.trf.xlu0 }
 0x289   : > { %1217 = vst.msk [vmem:[%s1523_s5 + $0x278] sm:$0xff] %vm360_vm5, %v883_v40  ;;  %1233 = vst.msk [vmem:[%s1523_s5 + $0x2f8] sm:$0xff] %vm360_vm5, %v915_v41 }
 0x28a PF: > { %s14_s14 = sadd.s32 1, %s1324_s14   ;;  %s1864_s12 = smov %s1320_s13 }
 0x28b   : > { %p11_p5 = scmp.ge.s32.totalorder %s14_s14, 4   ;;  %s1865_s13 = smov %s1867_s15 }
 0x28d   :  { %13 = sbr.rel (!%p11_p5) target bundleno = 2 (0x2), region = 78 }

</bundles_post_ra>
